<compile_context>
chip_gen: v7x
topology: tpu7x:2x2x1
jax: 0.10.0
libtpu: 0.0.40
codegen_flags: <defaults>
</compile_context>

<pallas_src>
import jax
import jax.numpy as jnp
from jax.experimental import pallas as pl
from jax.experimental.pallas import tpu as pltpu


def _mish_kernel(x_ref, o_ref):
    x = x_ref[...].astype(jnp.float32)
    t = jnp.exp(-jnp.abs(x))          # t in (0, 1], never overflows (EUP)
    t2 = t * t
    pos = x >= 0.0
    # tanh(softplus(x)) as a rational in t = exp(-|x|):
    #   x >= 0: (1 + 2t) / (1 + 2t + 2t^2)
    #   x <  0: (t^2 + 2t) / (t^2 + 2t + 2)
    num = 2.0 * t + jnp.where(pos, 1.0, t2)
    den = num + jnp.where(pos, 2.0 * t2, 2.0)        # den in [1, 5]
    # One EUP vrcp + two VALU Newton steps: exact-divide accuracy (rel err
    # ~f32 rounding) without a second EUP push per element.
    r = pl.reciprocal(den, approx=True)
    r = r * (2.0 - den * r)
    r = r * (2.0 - den * r)
    o_ref[...] = (x * num * r).astype(o_ref.dtype)


def _mish_jnp(x):
    """Plain-JAX Mish for tiny ragged tails (stable softplus, f32 compute)."""
    xf = x.astype(jnp.float32)
    sp = jnp.maximum(xf, 0.0) + jnp.log1p(jnp.exp(-jnp.abs(xf)))
    return (xf * jnp.tanh(sp)).astype(x.dtype)


def _tile_budget():
    """(per-block byte budget, vmem_limit_bytes) based on TPU generation."""
    try:
        kind = jax.devices()[0].device_kind.lower()
    except Exception:
        kind = ""
    if "v6" in kind or "v7" in kind:
        # 4 MiB blocks: in+out double-buffered ~= 16 MiB; pin the scoped VMEM
        # limit to 32 MiB so future tile bumps fail loudly instead of
        # silently overshooting (v7x has only 64 MiB physical per TC).
        return 4 * 1024 * 1024, 32 * 1024 * 1024
    # v5e (16 MiB default scoped VMEM) and unknown parts: 2 MiB blocks -> ~8 MiB.
    return 2 * 1024 * 1024, None


def _mish_2d(x2d, block_bytes, vmem_limit):
    rows, lanes = x2d.shape
    dtype = x2d.dtype
    itemsize = jnp.dtype(dtype).itemsize
    # Minimum sublane tile for the dtype: (8,128) f32, (16,128) bf16, (32,128) int8/fp8.
    sub = {4: 8, 2: 16, 1: 32}.get(itemsize, 8)

    # Biggest lane-dense block that fits the per-generation byte budget.
    block_rows = min(rows, max(1, block_bytes // (lanes * itemsize)))
    if block_rows < rows:
        block_rows = max(sub, (block_rows // sub) * sub)
        if block_rows > rows:
            block_rows = rows
    if block_rows == rows and rows >= 2 * sub:
        # Ensure >= 2 grid steps so the "parallel" axis can shard across both
        # TensorCores on megacore parts (v7x). Cheap elsewhere.
        block_rows = pl.cdiv(pl.cdiv(rows, 2), sub) * sub

    grid = pl.cdiv(rows, block_rows)

    return pl.pallas_call(
        _mish_kernel,
        out_shape=jax.ShapeDtypeStruct((rows, lanes), dtype),
        grid_spec=pltpu.PrefetchScalarGridSpec(
            num_scalar_prefetch=0,
            grid=(grid,),
            in_specs=[pl.BlockSpec((block_rows, lanes), lambda i: (i, 0))],
            out_specs=pl.BlockSpec((block_rows, lanes), lambda i: (i, 0)),
        ),
        compiler_params=pltpu.CompilerParams(
            dimension_semantics=("parallel",),
            vmem_limit_bytes=vmem_limit,
        ),
    )(x2d)


def mish(x):
    """Elementwise Mish. Accepts any shape/dtype; returns same shape/dtype."""
    orig_shape = x.shape
    n = x.size
    if n == 0:
        return x

    flat = x.reshape(-1)
    block_bytes, vmem_limit = _tile_budget()

    # Fast path: element count divides a lane-dense width -> single pallas_call
    # over a free (metadata-only) reshape. No pad, no slice, no extra copies.
    for lanes in (1024, 512, 256, 128):
        if n % lanes == 0 and n >= lanes:
            out2d = _mish_2d(flat.reshape(n // lanes, lanes), block_bytes, vmem_limit)
            return out2d.reshape(orig_shape)

    # Ragged path: kernel over the multiple-of-1024 prefix; the <1024-element
    # tail goes through plain JAX (mish(0)=0 would also make padding safe, but
    # this avoids the full-array pad + slice HBM round trip).
    n_main = (n // 1024) * 1024
    if n_main == 0:
        return _mish_jnp(flat).reshape(orig_shape)
    head = _mish_2d(flat[:n_main].reshape(n_main // 1024, 1024),
                    block_bytes, vmem_limit)
    tail = _mish_jnp(flat[n_main:])
    return jnp.concatenate([head.reshape(-1), tail]).reshape(orig_shape)


def _mish_ref(x):
    # plain-JAX reference: x * tanh(softplus(x)) with stable softplus
    xf = x.astype(jnp.float32)
    sp = jnp.maximum(xf, 0.0) + jnp.log1p(jnp.exp(-jnp.abs(xf)))
    return (xf * jnp.tanh(sp)).astype(x.dtype)


if __name__ == "__main__":
    key = jax.random.PRNGKey(0)

    # NCHW input, consistent with a PyTorch conv-net activation.
    x = jax.random.normal(key, (2, 4, 16, 16), dtype=jnp.float32) * 3.0
    y = jax.block_until_ready(mish(x))
    y_ref = _mish_ref(x)
    assert y.shape == x.shape and y.dtype == x.dtype
    assert jnp.max(jnp.abs(y - y_ref)) < 1e-5

    # Also exercise the ragged path (element count not a multiple of 128).
    x2 = jax.random.normal(jax.random.PRNGKey(1), (3, 5, 7, 11),
                           dtype=jnp.float32) * 3.0
    y2 = jax.block_until_ready(mish(x2))
    y2_ref = _mish_ref(x2)
    assert y2.shape == x2.shape and y2.dtype == x2.dtype
    assert jnp.max(jnp.abs(y2 - y2_ref)) < 1e-5

    print("KERNEL_OK")
</pallas_src>

<mosaic_0001>
module attributes {stable_mosaic.version = 11 : i64} {
  func.func @_mish_kernel(%arg0: i32, %arg1: memref<2x1024xf32, #tpu.memory_space<vmem>>, %arg2: memref<2x1024xf32, #tpu.memory_space<vmem>>) attributes {dimension_semantics = [#tpu.dimension_semantics<parallel>], iteration_bounds = array<i64: 1>, scalar_prefetch = 0 : i64, scratch_operands = 0 : i64, tpu.core_type = #tpu.core_type<tc>, window_params = [{transform_indices = @transform_0, window_bounds = array<i64: 2, 1024>}, {transform_indices = @transform_1, window_bounds = array<i64: 2, 1024>}]} {
    %c0 = arith.constant 0 : index
    %c0_0 = arith.constant 0 : index
    %0 = vector.load %arg1[%c0, %c0_0] : memref<2x1024xf32, #tpu.memory_space<vmem>>, vector<2x1024xf32>
    %1 = math.absf %0 : vector<2x1024xf32>
    %cst = arith.constant 0.000000e+00 : f32
    %2 = vector.broadcast %cst : f32 to vector<2x1024xf32>
    %3 = arith.subf %2, %1 : vector<2x1024xf32>
    %4 = math.exp %3 : vector<2x1024xf32>
    %5 = arith.mulf %4, %4 : vector<2x1024xf32>
    %cst_1 = arith.constant 0.000000e+00 : f32
    %6 = vector.broadcast %cst_1 : f32 to vector<2x1024xf32>
    %7 = arith.cmpf oge, %0, %6 : vector<2x1024xf32>
    %cst_2 = arith.constant 2.000000e+00 : f32
    %8 = vector.broadcast %cst_2 : f32 to vector<2x1024xf32>
    %9 = arith.mulf %8, %4 : vector<2x1024xf32>
    %cst_3 = arith.constant 1.000000e+00 : f32
    %10 = vector.broadcast %cst_3 : f32 to vector<2x1024xf32>
    %11 = arith.select %7, %10, %5 : vector<2x1024xi1>, vector<2x1024xf32>
    %12 = arith.addf %9, %11 : vector<2x1024xf32>
    %cst_4 = arith.constant 2.000000e+00 : f32
    %13 = vector.broadcast %cst_4 : f32 to vector<2x1024xf32>
    %14 = arith.mulf %13, %5 : vector<2x1024xf32>
    %cst_5 = arith.constant 2.000000e+00 : f32
    %15 = vector.broadcast %cst_5 : f32 to vector<2x1024xf32>
    %16 = arith.select %7, %14, %15 : vector<2x1024xi1>, vector<2x1024xf32>
    %17 = arith.addf %12, %16 : vector<2x1024xf32>
    %18 = tpu.reciprocal %17 {approx = true} : vector<2x1024xf32> -> vector<2x1024xf32>
    %19 = arith.mulf %17, %18 : vector<2x1024xf32>
    %cst_6 = arith.constant 2.000000e+00 : f32
    %20 = vector.broadcast %cst_6 : f32 to vector<2x1024xf32>
    %21 = arith.subf %20, %19 : vector<2x1024xf32>
    %22 = arith.mulf %18, %21 : vector<2x1024xf32>
    %23 = arith.mulf %17, %22 : vector<2x1024xf32>
    %cst_7 = arith.constant 2.000000e+00 : f32
    %24 = vector.broadcast %cst_7 : f32 to vector<2x1024xf32>
    %25 = arith.subf %24, %23 : vector<2x1024xf32>
    %26 = arith.mulf %22, %25 : vector<2x1024xf32>
    %27 = arith.mulf %0, %12 : vector<2x1024xf32>
    %28 = arith.mulf %27, %26 : vector<2x1024xf32>
    %c0_8 = arith.constant 0 : index
    %c0_9 = arith.constant 0 : index
    %29 = vector.load %arg2[%c0_8, %c0_9] : memref<2x1024xf32, #tpu.memory_space<vmem>>, vector<2x1024xf32>
    tpu.vector_store %arg2[%c0_8, %c0_9], %28 {strides = array<i32>} : memref<2x1024xf32, #tpu.memory_space<vmem>>, vector<2x1024xf32>,
    return
  }
  func.func @transform_0(%arg0: i32) -> (i32, i32) {
    %c0_i32 = arith.constant 0 : i32
    %c0_i32_0 = arith.constant 0 : i32
    return %arg0, %c0_i32 : i32, i32
  }
  func.func @transform_1(%arg0: i32) -> (i32, i32) {
    %c0_i32 = arith.constant 0 : i32
    %c0_i32_0 = arith.constant 0 : i32
    return %arg0, %c0_i32 : i32, i32
  }
}

</mosaic_0001>

<bundles_post_ra>
// kernel: tpu_custom_call.1
= control target key start
LH: loop header
LB: loop body
LE: loop exit
PB: predicated region body
PF: predicated region fallthrough
CT: control target
= control target key end

     0   :  { %6 = vsyncpa [#allocation3], 0  ;;  %s176_s0 = inlined_call_operand.hbm [shape: f32[2,1024], index: 0, kind: input, shape index: {}]   ;;  %s177_s1 = inlined_call_operand.hbm [shape: f32[2,1024], index: 1, kind: output, shape index: {}]  }
   0x1   :  { %7 = vsyncpa [#allocation4], 0  ;;  %s140_s6 = smov [#allocation2]   ;;  %s92_s10 = scalar_lea.hbm %s176_s0, 256 }
   0x2   :  { %s14_s7 = sshll.u32 %s140_s6, 4  ;;  %p93_p0 = scmp.ne.s32.totalorder %s176_s0, %s92_s10  ;;  %s15_s7 = int_to_ptr.vmem [resolvable:$true] %s14_s7 }
   0x3   :  { %p96_p1 = scmp.lt.u32.totalorder %s92_s10, %s176_s0 }
   0x5   :  { %p98_p2 = pnand %p96_p1, %p93_p0 }
   0x7   :  { %101 = shalt.err (!%p98_p2)
}
   0x8   :  { %s102_s15 = scalar_lea.vmem %s15_s7, 256  ;;  %p107_p4 = scmp.lt.s32.totalorder %s15_s7, %s15_s7 }
   0x9   :  { %p103_p3 = scmp.ne.s32.totalorder %s15_s7, %s102_s15  ;;  %p108_p5 = scmp.lt.s32.totalorder %s102_s15, %s102_s15 }
   0xb   :  { %p109_p6 = por %p108_p5, %p107_p4 }
   0xd   :  { %p110_p7 = pnand %p109_p6, %p103_p3 }
   0xf   :  { %113 = shalt.err (!%p110_p7)
}
  0x10   :  { %17 = dma.hbm_to_vmem [thread:$0]  %s176_s0, 256, %s15_s7, [#allocation3]  }
  0x11   :  { %136 = dma.done.wait [#allocation3], 256  }
  0x12   :  { %137 = vsyncadd [#allocation3], 4294967040  ;;  %v21_v0 = vld [vmem:[#allocation2] sm:$0xff]  ;;  %v22_v1 = vld [vmem:[#allocation2 + $0x8] sm:$0xff]  ;;  %s141_s0 = smov [#allocation5]  }
  0x13   :  { %v23_v2 = vand.u32 2147483647, %v21_v0  ;;  %v24_v3 = vand.u32 2147483647, %v22_v1  ;;  %vm33_vm0 = vcmp.ge.f32.partialorder %v21_v0, 0.0  ;;  %vm34_vm1 = vcmp.ge.f32.partialorder %v22_v1, 0.0 }
  0x14   :  { %s73_s18 = sshll.u32 %s141_s0, 4  ;;  %s74_s18 = int_to_ptr.vmem [resolvable:$true] %s73_s18 }
  0x15   :  { %v25_v4 = vsub.f32 0.0, %v23_v2  ;;  %v26_v5 = vsub.f32 0.0, %v24_v3  ;;  %s114_s19 = scalar_lea.vmem %s74_s18, 256  ;;  %p119_p9 = scmp.lt.s32.totalorder %s74_s18, %s74_s18 }
  0x16   :  { %p115_p8 = scmp.ne.s32.totalorder %s74_s18, %s114_s19  ;;  %p120_p10 = scmp.lt.s32.totalorder %s114_s19, %s114_s19 }
  0x17   :  { %v27_v6 = vmul.f32 1.442695, %v25_v4  ;;  %v29_v7 = vmul.f32 1.442695, %v26_v5 }
  0x18   :  { %p121_p11 = por %p120_p10, %p119_p9 }
  0x19   :  { %84 = vpow2.f32 %v27_v6 }
  0x1a   :  { %86 = vpow2.f32 %v29_v7  ;;  %p122_p12 = pnand %p121_p11, %p115_p8 }
  0x23   :  { %v85_v8 = vpop.eup %84 }
  0x24   :  { %v87_v9 = vpop.eup %86  ;;  %v31_v10 = vmul.f32 %v85_v8, %v85_v8  ;;  %v35_v11 = vmul.f32 2.0, %v85_v8 }
  0x25   :  { %v32_v12 = vmul.f32 %v87_v9, %v87_v9  ;;  %v36_v13 = vmul.f32 2.0, %v87_v9 }
  0x26   :  { %v37_v14 = vsel %vm33_vm0, 1.0, %v31_v10  ;;  %v41_v15 = vmul.f32 2.0, %v31_v10 }
  0x27   :  { %v39_v16 = vadd.f32 %v37_v14, %v35_v11  ;;  %v38_v17 = vsel %vm34_vm1, 1.0, %v32_v12  ;;  %v42_v18 = vmul.f32 2.0, %v32_v12 }
  0x28   :  { %v43_v19 = vsel %vm33_vm0, %v41_v15, 2.0  ;;  %v40_v20 = vadd.f32 %v38_v17, %v36_v13 }
  0x29   :  { %v45_v21 = vadd.f32 %v43_v19, %v39_v16  ;;  %v44_v22 = vsel %vm34_vm1, %v42_v18, 2.0  ;;  %v61_v35 = vmul.f32 %v39_v16, %v21_v0 }
  0x2a   :  { %v46_v23 = vadd.f32 %v44_v22, %v40_v20  ;;  %v62_v37 = vmul.f32 %v40_v20, %v22_v1 }
  0x2b   :  { %88 = vrcp.f32 %v45_v21 }
  0x2c   :  { %90 = vrcp.f32 %v46_v23 }
  0x35   :  { %v89_v24 = vpop.eup %88 }
  0x36   :  { %v91_v25 = vpop.eup %90  ;;  %v49_v26 = vmul.f32 %v89_v24, %v45_v21 }
  0x37   :  { %v50_v27 = vmul.f32 %v91_v25, %v46_v23 }
  0x38   :  { %v51_v28 = vsub.f32 2.0, %v49_v26 }
  0x39   :  { %v52_v29 = vsub.f32 2.0, %v50_v27 }
  0x3a   :  { %v53_v30 = vmul.f32 %v89_v24, %v51_v28 }
  0x3b   :  { %v54_v31 = vmul.f32 %v91_v25, %v52_v29 }
  0x3c   :  { %v55_v32 = vmul.f32 %v53_v30, %v45_v21 }
  0x3d   :  { %v56_v33 = vmul.f32 %v54_v31, %v46_v23 }
  0x3e   :  { %v57_v34 = vsub.f32 2.0, %v55_v32 }
  0x3f   :  { %v58_v36 = vsub.f32 2.0, %v56_v33 }
  0x40   :  { %v59_v38 = vmul.f32 %v57_v34, %v53_v30 }
  0x41   :  { %v60_v39 = vmul.f32 %v58_v36, %v54_v31 }
  0x42   :  { %v63_v40 = vmul.f32 %v61_v35, %v59_v38 }
  0x43   :  { %v64_v41 = vmul.f32 %v62_v37, %v60_v39 }
  0x44   :  { %65 = vst [vmem:[#allocation5] sm:$0xff] %v63_v40 }
  0x45   :  { %66 = vst [vmem:[#allocation5 + $0x8] sm:$0xff] %v64_v41 }
  0x46   :  { %125 = shalt.err (!%p122_p12)
}
  0x47   :  { %s126_s22 = scalar_lea.hbm %s177_s1, 256 }
  0x48   :  { %p127_p13 = scmp.ne.s32.totalorder %s177_s1, %s126_s22  ;;  %p130_p0 = scmp.lt.u32.totalorder %s126_s22, %s177_s1 }
  0x4a   :  { %p132_p1 = pnand %p130_p0, %p127_p13 }
  0x4c   :  { %135 = shalt.err (!%p132_p1)
}
  0x4d   :  { %76 = dma.vmem_to_hbm [thread:$0]  %s74_s18, 256, %s177_s1, [#allocation4]  }
  0x4e   :  { %138 = dma.done.wait [#allocation4], 256  }
  0x4f   :  { %139 = vsyncadd [#allocation4], 4294967040 }
  0x50   :  { %80 = vsyncpa [#allocation3], 1 }
  0x51   :  { %81 = vsyncpa [#allocation4], 1 }

</bundles_post_ra>
